<compile_context>
chip_gen: v7x
topology: tpu7x:2x2x1
jax: 0.10.0
libtpu: 0.0.40
codegen_flags: <defaults>
</compile_context>

<pallas_src>
import functools
import math

import jax
import jax.numpy as jnp
from jax.experimental import pallas as pl
from jax.experimental.pallas import tpu as pltpu


def _rel_shift(x, zero_triu=False):
    """JAX transliteration of RelPositionMultiHeadedAttention.rel_shift.

    x: (batch, head, time1, 2*time1-1)  ->  (batch, head, time1, time1)
    """
    b, h, t1, p = x.shape
    zero_pad = jnp.zeros((b, h, t1, 1), dtype=x.dtype)
    x_padded = jnp.concatenate([zero_pad, x], axis=-1)            # (b,h,t1,p+1)
    x_padded = x_padded.reshape(b, h, p + 1, t1)
    x = x_padded[:, :, 1:, :].reshape(b, h, t1, p)[:, :, :, : p // 2 + 1]
    if zero_triu:
        ones = jnp.ones((t1, x.shape[3]), dtype=x.dtype)
        x = x * jnp.tril(ones, x.shape[3] - t1)[None, None, :, :]
    return x


def _pick_query_tile(t1):
    """Largest MXU-friendly query tile that divides T1 (falls back to full)."""
    for cand in (512, 256, 128):
        if t1 % cand == 0:
            return cand
    return t1


def _relpos_attn_core_kernel(qu_ref, k_ref, v_ref, bd_ref, mbias_ref, o_ref, *,
                             n_head, d_k):
    """Fused attention core for one (batch, query-tile) block.

    qu_ref:    (1, TQ, n_feat) bf16  (q + pos_bias_u) / sqrt(d_k), head-major cols
    k_ref:     (1, T2, n_feat) bf16
    v_ref:     (1, T2, n_feat) bf16
    bd_ref:    (1, H, TQ, T2)  bf16  rel-shifted, pre-scaled positional scores
    mbias_ref: (1, 1,  T2)     f32   additive key-mask bias (0 / -1e30)
    o_ref:     (1, TQ, n_feat) f32
    """
    mb = mbias_ref[0]                                   # (1, T2) — broadcasts

    for h in range(n_head):                             # static head unroll
        s = h * d_k
        qu = qu_ref[0, :, s:s + d_k]                    # (TQ, d_k) bf16
        kh = k_ref[0, :, s:s + d_k]                     # (T2, d_k) bf16
        vh = v_ref[0, :, s:s + d_k]                     # (T2, d_k) bf16

        # matrix_ac = (q + bias_u)/sqrt(d_k) @ k^T — bf16 MXU, f32 accumulate.
        ac = jax.lax.dot_general(qu, kh, (((1,), (1,)), ((), ())),
                                 preferred_element_type=jnp.float32)
        scores = ac + bd_ref[0, h].astype(jnp.float32) + mb        # f32 (TQ,T2)

        # Numerically stable softmax in f32; normalisation deferred past the
        # PV matmul so the per-element divide becomes one EUP reciprocal/row.
        m = jnp.max(scores, axis=-1, keepdims=True)
        e = jnp.exp(scores - m)
        denom = jnp.sum(e, axis=-1, keepdims=True)
        ctx = jnp.dot(e.astype(jnp.bfloat16), vh,
                      preferred_element_type=jnp.float32)          # (TQ, d_k)
        ctx = ctx * pl.reciprocal(denom, approx=True)
        o_ref[0, :, s:s + d_k] = ctx.astype(o_ref.dtype)


def relpos_mha_forward(params, query, key, value, pos_emb, mask, *, n_head,
                       zero_triu=False):
    """Forward pass of RelPositionMultiHeadedAttention (inference, no dropout).

    mask: optional (B, T2) bool key-padding mask, True = masked-out key.
    """
    B, T1, n_feat = query.shape
    T2 = key.shape[1]
    assert T1 == T2, "this module requires time1 == time2"
    assert n_feat % n_head == 0
    d_k = n_feat // n_head
    scale = 1.0 / math.sqrt(d_k)

    # ---- projections (plain XLA GEMMs, default precision; y = x @ W^T + b) ----
    q = query @ params["wq"].T + params["bq"]            # (B, T1, n_feat)
    k = key @ params["wk"].T + params["bk"]              # (B, T2, n_feat)
    v = value @ params["wv"].T + params["bv"]            # (B, T2, n_feat)

    bias_u = params["pos_bias_u"].reshape(n_feat)        # head-major flat
    bias_v = params["pos_bias_v"].reshape(n_feat)

    # Fold 1/sqrt(d_k) into q_u / q_v once; bf16 operands for the MXU dots.
    q_u = ((q + bias_u) * scale).astype(jnp.bfloat16)
    k_b = k.astype(jnp.bfloat16)
    v_b = v.astype(jnp.bfloat16)

    # ---- relative-position (BD) term: GEMM + rel_shift kept in XLA, staged
    # pre-scaled and in bf16 (halves the O(B*H*T^2) HBM traffic).
    # TODO(synk): fuse the BD GEMM + rel_shift into the kernel via a strided
    # pltpu.roll once its per-row stride semantics are validated on-device.
    Bp, P = pos_emb.shape[0], pos_emb.shape[1]
    assert P == 2 * T1 - 1, "pos_emb must have length 2*time1-1"
    p = (pos_emb @ params["wpos"].T).reshape(Bp, P, n_head, d_k)
    p = jnp.broadcast_to(p, (B, P, n_head, d_k))
    q_v = ((q + bias_v) * scale).reshape(B, T1, n_head, d_k)
    matrix_bd = jnp.einsum("bqhd,bphd->bhqp", q_v, p)              # (B,H,T1,P)
    bd_shift = _rel_shift(matrix_bd, zero_triu).astype(jnp.bfloat16)

    if mask is not None:
        # mask: (B, T2) bool, True = masked-out key position.  Kept in f32 so
        # the -1e30 bias survives the bf16 score operands.
        mask_bias = jnp.where(mask.reshape(B, 1, T2), -1e30, 0.0)
        mask_bias = mask_bias.astype(jnp.float32)
    else:
        mask_bias = jnp.zeros((B, 1, T2), jnp.float32)
    # TODO(synk): for pure length-padding masks, pass per-batch lengths through
    # num_scalar_prefetch and build the bias in-kernel with broadcasted_iota.

    tq = _pick_query_tile(T1)
    nq = T1 // tq

    # Per-grid-step VMEM residency (single-buffered); size the scoped VMEM
    # limit from it, capped below physical VMEM on every generation.
    step_bytes = (tq * n_feat * 2 + 2 * T2 * n_feat * 2
                  + n_head * tq * T2 * 2 + T2 * 4 + tq * n_feat * 4)
    vmem_limit = int(min(max(32 * 1024 * 1024, 3 * step_bytes),
                         60 * 1024 * 1024))

    flops = int(B * n_head * (4 * T1 * T2 * d_k + 6 * T1 * T2))
    bytes_accessed = int(B * (3 * T2 * n_feat * 2 + T1 * n_feat * 2
                              + n_head * T1 * T2 * 2 + T2 * 4
                              + T1 * n_feat * 4))

    ctx = pl.pallas_call(
        functools.partial(_relpos_attn_core_kernel, n_head=n_head, d_k=d_k),
        out_shape=jax.ShapeDtypeStruct((B, T1, n_feat), jnp.float32),
        grid_spec=pltpu.PrefetchScalarGridSpec(
            num_scalar_prefetch=0,
            grid=(B, nq),
            in_specs=[
                pl.BlockSpec((1, tq, n_feat), lambda b, i: (b, i, 0)),      # q+u
                pl.BlockSpec((1, T2, n_feat), lambda b, i: (b, 0, 0)),      # k
                pl.BlockSpec((1, T2, n_feat), lambda b, i: (b, 0, 0)),      # v
                pl.BlockSpec((1, n_head, tq, T2), lambda b, i: (b, 0, i, 0)),  # bd
                pl.BlockSpec((1, 1, T2), lambda b, i: (b, 0, 0)),           # mask
            ],
            out_specs=pl.BlockSpec((1, tq, n_feat), lambda b, i: (b, i, 0)),
        ),
        compiler_params=pltpu.CompilerParams(
            dimension_semantics=("parallel", "parallel"),
            vmem_limit_bytes=vmem_limit,
        ),
        cost_estimate=pl.CostEstimate(
            flops=flops,
            transcendentals=int(B * n_head * T1 * T2),
            bytes_accessed=bytes_accessed,
        ),
    )(q_u, k_b, v_b, bd_shift, mask_bias)

    return ctx @ params["wout"].T + params["bout"]


def reference_forward(params, query, key, value, pos_emb, mask, *, n_head,
                      zero_triu=False):
    """Pure-JAX transliteration of the PyTorch module (eval mode)."""
    B, T1, n_feat = query.shape
    d_k = n_feat // n_head

    def lin(x, w, b=None):
        y = x @ w.T
        return y if b is None else y + b

    q = lin(query, params["wq"], params["bq"]).reshape(B, -1, n_head, d_k)
    k = jnp.transpose(lin(key, params["wk"], params["bk"])
                      .reshape(B, -1, n_head, d_k), (0, 2, 1, 3))
    v = jnp.transpose(lin(value, params["wv"], params["bv"])
                      .reshape(B, -1, n_head, d_k), (0, 2, 1, 3))
    Bp = pos_emb.shape[0]
    p = jnp.transpose(lin(pos_emb, params["wpos"])
                      .reshape(Bp, -1, n_head, d_k), (0, 2, 1, 3))
    p = jnp.broadcast_to(p, (B,) + p.shape[1:])

    q_u = jnp.transpose(q + params["pos_bias_u"], (0, 2, 1, 3))
    q_v = jnp.transpose(q + params["pos_bias_v"], (0, 2, 1, 3))

    matrix_ac = jnp.einsum("bhqd,bhkd->bhqk", q_u, k)
    matrix_bd = _rel_shift(jnp.einsum("bhqd,bhpd->bhqp", q_v, p), zero_triu)
    scores = (matrix_ac + matrix_bd) / math.sqrt(d_k)
    if mask is not None:
        scores = jnp.where(mask[:, None, None, :], -jnp.inf, scores)
    attn = jax.nn.softmax(scores, axis=-1)
    x = jnp.einsum("bhqk,bhkd->bhqd", attn, v)
    x = jnp.transpose(x, (0, 2, 1, 3)).reshape(B, T1, n_head * d_k)
    return lin(x, params["wout"], params["bout"])


if __name__ == "__main__":
    n_head, n_feat = 4, 64
    B, T = 2, 8
    d_k = n_feat // n_head

    key0 = jax.random.PRNGKey(0)
    keys = jax.random.split(key0, 12)

    def init(k, shape, s=0.1):
        return (s * jax.random.normal(k, shape)).astype(jnp.float32)

    params = {
        "wq": init(keys[0], (n_feat, n_feat)),
        "bq": init(keys[1], (n_feat,)),
        "wk": init(keys[2], (n_feat, n_feat)),
        "bk": init(keys[3], (n_feat,)),
        "wv": init(keys[4], (n_feat, n_feat)),
        "bv": init(keys[5], (n_feat,)),
        "wout": init(keys[6], (n_feat, n_feat)),
        "bout": init(keys[7], (n_feat,)),
        "wpos": init(keys[8], (n_feat, n_feat)),
        "pos_bias_u": init(keys[9], (n_head, d_k)),
        "pos_bias_v": init(keys[10], (n_head, d_k)),
    }

    dkeys = jax.random.split(keys[11], 4)
    query = jax.random.normal(dkeys[0], (B, T, n_feat), dtype=jnp.float32)
    key_in = jax.random.normal(dkeys[1], (B, T, n_feat), dtype=jnp.float32)
    value = jax.random.normal(dkeys[2], (B, T, n_feat), dtype=jnp.float32)
    pos_emb = jax.random.normal(dkeys[3], (1, 2 * T - 1, n_feat),
                                dtype=jnp.float32)
    # Padding mask: True = masked-out key position (batch 1 has 2 padded keys).
    lengths = jnp.array([T, T - 2])
    mask = jnp.arange(T)[None, :] >= lengths[:, None]          # (B, T) bool

    fwd = jax.jit(relpos_mha_forward, static_argnames=("n_head", "zero_triu"))
    out = fwd(params, query, key_in, value, pos_emb, mask, n_head=n_head)
    jax.block_until_ready(out)

    # Ground-truth reference at full precision (scoped here only — the kernel
    # path intentionally uses bf16 MXU operands), so tolerance is bf16-level.
    with jax.default_matmul_precision("highest"):
        ref = reference_forward(params, query, key_in, value, pos_emb, mask,
                                n_head=n_head)
        ref = jax.block_until_ready(ref)

    assert out.shape == (B, T, n_feat), out.shape
    max_err = float(jnp.max(jnp.abs(out - ref)))
    assert jnp.allclose(out, ref, atol=5e-2, rtol=5e-2), f"max_err={max_err}"

    print("KERNEL_OK")
</pallas_src>

<mosaic_0001>
module attributes {stable_mosaic.version = 11 : i64} {
  func.func @_relpos_attn_core_kernel(%arg0: i32, %arg1: i32, %arg2: memref<1x8x64xbf16, #tpu.memory_space<vmem>>, %arg3: memref<1x8x64xbf16, #tpu.memory_space<vmem>>, %arg4: memref<1x8x64xbf16, #tpu.memory_space<vmem>>, %arg5: memref<1x4x8x8xbf16, #tpu.memory_space<vmem>>, %arg6: memref<1x1x8xf32, #tpu.memory_space<vmem>>, %arg7: memref<1x8x64xf32, #tpu.memory_space<vmem>>) attributes {dimension_semantics = [#tpu.dimension_semantics<parallel>, #tpu.dimension_semantics<parallel>], iteration_bounds = array<i64: 2, 1>, scalar_prefetch = 0 : i64, scratch_operands = 0 : i64, tpu.core_type = #tpu.core_type<tc>, window_params = [{transform_indices = @transform_0, window_bounds = array<i64: 1, 8, 64>}, {transform_indices = @transform_1, window_bounds = array<i64: 1, 8, 64>}, {transform_indices = @transform_2, window_bounds = array<i64: 1, 8, 64>}, {transform_indices = @transform_3, window_bounds = array<i64: 1, 4, 8, 8>}, {transform_indices = @transform_4, window_bounds = array<i64: 1, 1, 8>}, {transform_indices = @transform_5, window_bounds = array<i64: 1, 8, 64>}]} {
    %c0 = arith.constant 0 : index
    %c0_0 = arith.constant 0 : index
    %c0_1 = arith.constant 0 : index
    %0 = vector.load %arg6[%c0, %c0_0, %c0_1] : memref<1x1x8xf32, #tpu.memory_space<vmem>>, vector<1x1x8xf32>
    %1 = vector.shape_cast %0 : vector<1x1x8xf32> to vector<1x8xf32>
    %c0_2 = arith.constant 0 : index
    %c0_3 = arith.constant 0 : index
    %c0_4 = arith.constant 0 : index
    %2 = vector.load %arg2[%c0_2, %c0_3, %c0_4] : memref<1x8x64xbf16, #tpu.memory_space<vmem>>, vector<1x8x16xbf16>
    %3 = vector.shape_cast %2 : vector<1x8x16xbf16> to vector<8x16xbf16>
    %c0_5 = arith.constant 0 : index
    %c0_6 = arith.constant 0 : index
    %c0_7 = arith.constant 0 : index
    %4 = vector.load %arg3[%c0_5, %c0_6, %c0_7] : memref<1x8x64xbf16, #tpu.memory_space<vmem>>, vector<1x8x16xbf16>
    %5 = vector.shape_cast %4 : vector<1x8x16xbf16> to vector<8x16xbf16>
    %c0_8 = arith.constant 0 : index
    %c0_9 = arith.constant 0 : index
    %c0_10 = arith.constant 0 : index
    %6 = vector.load %arg4[%c0_8, %c0_9, %c0_10] : memref<1x8x64xbf16, #tpu.memory_space<vmem>>, vector<1x8x16xbf16>
    %7 = vector.shape_cast %6 : vector<1x8x16xbf16> to vector<8x16xbf16>
    %cst = arith.constant dense<0.000000e+00> : vector<8x8xf32>
    %8 = tpu.matmul %3, %5, %cst {dimension_numbers = #tpu.dot_dimension_numbers<[1], [1], [0], [0], [0, 0, 1, 0], [], []>} : vector<8x16xbf16>, vector<8x16xbf16>, vector<8x8xf32> -> vector<8x8xf32>
    %c0_11 = arith.constant 0 : index
    %c0_12 = arith.constant 0 : index
    %c0_13 = arith.constant 0 : index
    %c0_14 = arith.constant 0 : index
    %9 = vector.load %arg5[%c0_11, %c0_12, %c0_13, %c0_14] : memref<1x4x8x8xbf16, #tpu.memory_space<vmem>>, vector<1x1x8x8xbf16>
    %10 = vector.shape_cast %9 : vector<1x1x8x8xbf16> to vector<8x8xbf16>
    %11 = arith.extf %10 : vector<8x8xbf16> to vector<8x8xf32>
    %12 = arith.addf %8, %11 : vector<8x8xf32>
    %13 = vector.broadcast %1 : vector<1x8xf32> to vector<8x8xf32>
    %14 = arith.addf %12, %13 : vector<8x8xf32>
    %cst_15 = arith.constant dense<0xFF800000> : vector<8xf32>
    %15 = vector.multi_reduction <maximumf>, %14, %cst_15 [1] : vector<8x8xf32> to vector<8xf32>
    %16 = vector.shape_cast %15 : vector<8xf32> to vector<8x1xf32>
    %17 = vector.broadcast %16 : vector<8x1xf32> to vector<8x8xf32>
    %18 = arith.subf %14, %17 : vector<8x8xf32>
    %19 = math.exp %18 : vector<8x8xf32>
    %cst_16 = arith.constant dense<0.000000e+00> : vector<8xf32>
    %20 = vector.multi_reduction <add>, %19, %cst_16 [1] : vector<8x8xf32> to vector<8xf32>
    %21 = vector.shape_cast %20 : vector<8xf32> to vector<8x1xf32>
    %22 = arith.truncf %19 : vector<8x8xf32> to vector<8x8xbf16>
    %cst_17 = arith.constant dense<0.000000e+00> : vector<8x16xf32>
    %23 = tpu.matmul %22, %7, %cst_17 {dimension_numbers = #tpu.dot_dimension_numbers<[1], [0], [0], [1], [0, 0, 1, 1], [], []>} : vector<8x8xbf16>, vector<8x16xbf16>, vector<8x16xf32> -> vector<8x16xf32>
    %24 = tpu.reciprocal %21 {approx = true} : vector<8x1xf32> -> vector<8x1xf32>
    %25 = vector.broadcast %24 : vector<8x1xf32> to vector<8x16xf32>
    %26 = arith.mulf %23, %25 : vector<8x16xf32>
    %c0_18 = arith.constant 0 : index
    %c0_19 = arith.constant 0 : index
    %c0_20 = arith.constant 0 : index
    %27 = vector.load %arg7[%c0_18, %c0_19, %c0_20] : memref<1x8x64xf32, #tpu.memory_space<vmem>>, vector<1x8x16xf32>
    %28 = vector.shape_cast %27 : vector<1x8x16xf32> to vector<8x16xf32>
    %29 = vector.shape_cast %26 : vector<8x16xf32> to vector<1x8x16xf32>
    tpu.vector_store %arg7[%c0_18, %c0_19, %c0_20], %29 {strides = array<i32>} : memref<1x8x64xf32, #tpu.memory_space<vmem>>, vector<1x8x16xf32>,
    %c0_21 = arith.constant 0 : index
    %c0_22 = arith.constant 0 : index
    %c16 = arith.constant 16 : index
    %30 = vector.load %arg2[%c0_21, %c0_22, %c16] : memref<1x8x64xbf16, #tpu.memory_space<vmem>>, vector<1x8x16xbf16>
    %31 = vector.shape_cast %30 : vector<1x8x16xbf16> to vector<8x16xbf16>
    %c0_23 = arith.constant 0 : index
    %c0_24 = arith.constant 0 : index
    %c16_25 = arith.constant 16 : index
    %32 = vector.load %arg3[%c0_23, %c0_24, %c16_25] : memref<1x8x64xbf16, #tpu.memory_space<vmem>>, vector<1x8x16xbf16>
    %33 = vector.shape_cast %32 : vector<1x8x16xbf16> to vector<8x16xbf16>
    %c0_26 = arith.constant 0 : index
    %c0_27 = arith.constant 0 : index
    %c16_28 = arith.constant 16 : index
    %34 = vector.load %arg4[%c0_26, %c0_27, %c16_28] : memref<1x8x64xbf16, #tpu.memory_space<vmem>>, vector<1x8x16xbf16>
    %35 = vector.shape_cast %34 : vector<1x8x16xbf16> to vector<8x16xbf16>
    %cst_29 = arith.constant dense<0.000000e+00> : vector<8x8xf32>
    %36 = tpu.matmul %31, %33, %cst_29 {dimension_numbers = #tpu.dot_dimension_numbers<[1], [1], [0], [0], [0, 0, 1, 0], [], []>} : vector<8x16xbf16>, vector<8x16xbf16>, vector<8x8xf32> -> vector<8x8xf32>
    %c0_30 = arith.constant 0 : index
    %c1 = arith.constant 1 : index
    %c0_31 = arith.constant 0 : index
    %c0_32 = arith.constant 0 : index
    %37 = vector.load %arg5[%c0_30, %c1, %c0_31, %c0_32] : memref<1x4x8x8xbf16, #tpu.memory_space<vmem>>, vector<1x1x8x8xbf16>
    %38 = vector.shape_cast %37 : vector<1x1x8x8xbf16> to vector<8x8xbf16>
    %39 = arith.extf %38 : vector<8x8xbf16> to vector<8x8xf32>
    %40 = arith.addf %36, %39 : vector<8x8xf32>
    %41 = vector.broadcast %1 : vector<1x8xf32> to vector<8x8xf32>
    %42 = arith.addf %40, %41 : vector<8x8xf32>
    %cst_33 = arith.constant dense<0xFF800000> : vector<8xf32>
    %43 = vector.multi_reduction <maximumf>, %42, %cst_33 [1] : vector<8x8xf32> to vector<8xf32>
    %44 = vector.shape_cast %43 : vector<8xf32> to vector<8x1xf32>
    %45 = vector.broadcast %44 : vector<8x1xf32> to vector<8x8xf32>
    %46 = arith.subf %42, %45 : vector<8x8xf32>
    %47 = math.exp %46 : vector<8x8xf32>
    %cst_34 = arith.constant dense<0.000000e+00> : vector<8xf32>
    %48 = vector.multi_reduction <add>, %47, %cst_34 [1] : vector<8x8xf32> to vector<8xf32>
    %49 = vector.shape_cast %48 : vector<8xf32> to vector<8x1xf32>
    %50 = arith.truncf %47 : vector<8x8xf32> to vector<8x8xbf16>
    %cst_35 = arith.constant dense<0.000000e+00> : vector<8x16xf32>
    %51 = tpu.matmul %50, %35, %cst_35 {dimension_numbers = #tpu.dot_dimension_numbers<[1], [0], [0], [1], [0, 0, 1, 1], [], []>} : vector<8x8xbf16>, vector<8x16xbf16>, vector<8x16xf32> -> vector<8x16xf32>
    %52 = tpu.reciprocal %49 {approx = true} : vector<8x1xf32> -> vector<8x1xf32>
    %53 = vector.broadcast %52 : vector<8x1xf32> to vector<8x16xf32>
    %54 = arith.mulf %51, %53 : vector<8x16xf32>
    %c0_36 = arith.constant 0 : index
    %c0_37 = arith.constant 0 : index
    %c16_38 = arith.constant 16 : index
    %55 = vector.load %arg7[%c0_36, %c0_37, %c16_38] : memref<1x8x64xf32, #tpu.memory_space<vmem>>, vector<1x8x16xf32>
    %56 = vector.shape_cast %55 : vector<1x8x16xf32> to vector<8x16xf32>
    %57 = vector.shape_cast %54 : vector<8x16xf32> to vector<1x8x16xf32>
    tpu.vector_store %arg7[%c0_36, %c0_37, %c16_38], %57 {strides = array<i32>} : memref<1x8x64xf32, #tpu.memory_space<vmem>>, vector<1x8x16xf32>,
    %c0_39 = arith.constant 0 : index
    %c0_40 = arith.constant 0 : index
    %c32 = arith.constant 32 : index
    %58 = vector.load %arg2[%c0_39, %c0_40, %c32] : memref<1x8x64xbf16, #tpu.memory_space<vmem>>, vector<1x8x16xbf16>
    %59 = vector.shape_cast %58 : vector<1x8x16xbf16> to vector<8x16xbf16>
    %c0_41 = arith.constant 0 : index
    %c0_42 = arith.constant 0 : index
    %c32_43 = arith.constant 32 : index
    %60 = vector.load %arg3[%c0_41, %c0_42, %c32_43] : memref<1x8x64xbf16, #tpu.memory_space<vmem>>, vector<1x8x16xbf16>
    %61 = vector.shape_cast %60 : vector<1x8x16xbf16> to vector<8x16xbf16>
    %c0_44 = arith.constant 0 : index
    %c0_45 = arith.constant 0 : index
    %c32_46 = arith.constant 32 : index
    %62 = vector.load %arg4[%c0_44, %c0_45, %c32_46] : memref<1x8x64xbf16, #tpu.memory_space<vmem>>, vector<1x8x16xbf16>
    %63 = vector.shape_cast %62 : vector<1x8x16xbf16> to vector<8x16xbf16>
    %cst_47 = arith.constant dense<0.000000e+00> : vector<8x8xf32>
    %64 = tpu.matmul %59, %61, %cst_47 {dimension_numbers = #tpu.dot_dimension_numbers<[1], [1], [0], [0], [0, 0, 1, 0], [], []>} : vector<8x16xbf16>, vector<8x16xbf16>, vector<8x8xf32> -> vector<8x8xf32>
    %c0_48 = arith.constant 0 : index
    %c2 = arith.constant 2 : index
    %c0_49 = arith.constant 0 : index
    %c0_50 = arith.constant 0 : index
    %65 = vector.load %arg5[%c0_48, %c2, %c0_49, %c0_50] : memref<1x4x8x8xbf16, #tpu.memory_space<vmem>>, vector<1x1x8x8xbf16>
    %66 = vector.shape_cast %65 : vector<1x1x8x8xbf16> to vector<8x8xbf16>
    %67 = arith.extf %66 : vector<8x8xbf16> to vector<8x8xf32>
    %68 = arith.addf %64, %67 : vector<8x8xf32>
    %69 = vector.broadcast %1 : vector<1x8xf32> to vector<8x8xf32>
    %70 = arith.addf %68, %69 : vector<8x8xf32>
    %cst_51 = arith.constant dense<0xFF800000> : vector<8xf32>
    %71 = vector.multi_reduction <maximumf>, %70, %cst_51 [1] : vector<8x8xf32> to vector<8xf32>
    %72 = vector.shape_cast %71 : vector<8xf32> to vector<8x1xf32>
    %73 = vector.broadcast %72 : vector<8x1xf32> to vector<8x8xf32>
    %74 = arith.subf %70, %73 : vector<8x8xf32>
    %75 = math.exp %74 : vector<8x8xf32>
    %cst_52 = arith.constant dense<0.000000e+00> : vector<8xf32>
    %76 = vector.multi_reduction <add>, %75, %cst_52 [1] : vector<8x8xf32> to vector<8xf32>
    %77 = vector.shape_cast %76 : vector<8xf32> to vector<8x1xf32>
    %78 = arith.truncf %75 : vector<8x8xf32> to vector<8x8xbf16>
    %cst_53 = arith.constant dense<0.000000e+00> : vector<8x16xf32>
    %79 = tpu.matmul %78, %63, %cst_53 {dimension_numbers = #tpu.dot_dimension_numbers<[1], [0], [0], [1], [0, 0, 1, 1], [], []>} : vector<8x8xbf16>, vector<8x16xbf16>, vector<8x16xf32> -> vector<8x16xf32>
    %80 = tpu.reciprocal %77 {approx = true} : vector<8x1xf32> -> vector<8x1xf32>
    %81 = vector.broadcast %80 : vector<8x1xf32> to vector<8x16xf32>
    %82 = arith.mulf %79, %81 : vector<8x16xf32>
    %c0_54 = arith.constant 0 : index
    %c0_55 = arith.constant 0 : index
    %c32_56 = arith.constant 32 : index
    %83 = vector.load %arg7[%c0_54, %c0_55, %c32_56] : memref<1x8x64xf32, #tpu.memory_space<vmem>>, vector<1x8x16xf32>
    %84 = vector.shape_cast %83 : vector<1x8x16xf32> to vector<8x16xf32>
    %85 = vector.shape_cast %82 : vector<8x16xf32> to vector<1x8x16xf32>
    tpu.vector_store %arg7[%c0_54, %c0_55, %c32_56], %85 {strides = array<i32>} : memref<1x8x64xf32, #tpu.memory_space<vmem>>, vector<1x8x16xf32>,
    %c0_57 = arith.constant 0 : index
    %c0_58 = arith.constant 0 : index
    %c48 = arith.constant 48 : index
    %86 = vector.load %arg2[%c0_57, %c0_58, %c48] : memref<1x8x64xbf16, #tpu.memory_space<vmem>>, vector<1x8x16xbf16>
    %87 = vector.shape_cast %86 : vector<1x8x16xbf16> to vector<8x16xbf16>
    %c0_59 = arith.constant 0 : index
    %c0_60 = arith.constant 0 : index
    %c48_61 = arith.constant 48 : index
    %88 = vector.load %arg3[%c0_59, %c0_60, %c48_61] : memref<1x8x64xbf16, #tpu.memory_space<vmem>>, vector<1x8x16xbf16>
    %89 = vector.shape_cast %88 : vector<1x8x16xbf16> to vector<8x16xbf16>
    %c0_62 = arith.constant 0 : index
    %c0_63 = arith.constant 0 : index
    %c48_64 = arith.constant 48 : index
    %90 = vector.load %arg4[%c0_62, %c0_63, %c48_64] : memref<1x8x64xbf16, #tpu.memory_space<vmem>>, vector<1x8x16xbf16>
    %91 = vector.shape_cast %90 : vector<1x8x16xbf16> to vector<8x16xbf16>
    %cst_65 = arith.constant dense<0.000000e+00> : vector<8x8xf32>
    %92 = tpu.matmul %87, %89, %cst_65 {dimension_numbers = #tpu.dot_dimension_numbers<[1], [1], [0], [0], [0, 0, 1, 0], [], []>} : vector<8x16xbf16>, vector<8x16xbf16>, vector<8x8xf32> -> vector<8x8xf32>
    %c0_66 = arith.constant 0 : index
    %c3 = arith.constant 3 : index
    %c0_67 = arith.constant 0 : index
    %c0_68 = arith.constant 0 : index
    %93 = vector.load %arg5[%c0_66, %c3, %c0_67, %c0_68] : memref<1x4x8x8xbf16, #tpu.memory_space<vmem>>, vector<1x1x8x8xbf16>
    %94 = vector.shape_cast %93 : vector<1x1x8x8xbf16> to vector<8x8xbf16>
    %95 = arith.extf %94 : vector<8x8xbf16> to vector<8x8xf32>
    %96 = arith.addf %92, %95 : vector<8x8xf32>
    %97 = vector.broadcast %1 : vector<1x8xf32> to vector<8x8xf32>
    %98 = arith.addf %96, %97 : vector<8x8xf32>
    %cst_69 = arith.constant dense<0xFF800000> : vector<8xf32>
    %99 = vector.multi_reduction <maximumf>, %98, %cst_69 [1] : vector<8x8xf32> to vector<8xf32>
    %100 = vector.shape_cast %99 : vector<8xf32> to vector<8x1xf32>
    %101 = vector.broadcast %100 : vector<8x1xf32> to vector<8x8xf32>
    %102 = arith.subf %98, %101 : vector<8x8xf32>
    %103 = math.exp %102 : vector<8x8xf32>
    %cst_70 = arith.constant dense<0.000000e+00> : vector<8xf32>
    %104 = vector.multi_reduction <add>, %103, %cst_70 [1] : vector<8x8xf32> to vector<8xf32>
    %105 = vector.shape_cast %104 : vector<8xf32> to vector<8x1xf32>
    %106 = arith.truncf %103 : vector<8x8xf32> to vector<8x8xbf16>
    %cst_71 = arith.constant dense<0.000000e+00> : vector<8x16xf32>
    %107 = tpu.matmul %106, %91, %cst_71 {dimension_numbers = #tpu.dot_dimension_numbers<[1], [0], [0], [1], [0, 0, 1, 1], [], []>} : vector<8x8xbf16>, vector<8x16xbf16>, vector<8x16xf32> -> vector<8x16xf32>
    %108 = tpu.reciprocal %105 {approx = true} : vector<8x1xf32> -> vector<8x1xf32>
    %109 = vector.broadcast %108 : vector<8x1xf32> to vector<8x16xf32>
    %110 = arith.mulf %107, %109 : vector<8x16xf32>
    %c0_72 = arith.constant 0 : index
    %c0_73 = arith.constant 0 : index
    %c48_74 = arith.constant 48 : index
    %111 = vector.load %arg7[%c0_72, %c0_73, %c48_74] : memref<1x8x64xf32, #tpu.memory_space<vmem>>, vector<1x8x16xf32>
    %112 = vector.shape_cast %111 : vector<1x8x16xf32> to vector<8x16xf32>
    %113 = vector.shape_cast %110 : vector<8x16xf32> to vector<1x8x16xf32>
    tpu.vector_store %arg7[%c0_72, %c0_73, %c48_74], %113 {strides = array<i32>} : memref<1x8x64xf32, #tpu.memory_space<vmem>>, vector<1x8x16xf32>,
    return
  }
  func.func @transform_0(%arg0: i32, %arg1: i32) -> (i32, i32, i32) {
    %c0_i32 = arith.constant 0 : i32
    %c0_i32_0 = arith.constant 0 : i32
    return %arg0, %arg1, %c0_i32 : i32, i32, i32
  }
  func.func @transform_1(%arg0: i32, %arg1: i32) -> (i32, i32, i32) {
    %c0_i32 = arith.constant 0 : i32
    %c0_i32_0 = arith.constant 0 : i32
    %c0_i32_1 = arith.constant 0 : i32
    return %arg0, %c0_i32, %c0_i32_0 : i32, i32, i32
  }
  func.func @transform_2(%arg0: i32, %arg1: i32) -> (i32, i32, i32) {
    %c0_i32 = arith.constant 0 : i32
    %c0_i32_0 = arith.constant 0 : i32
    %c0_i32_1 = arith.constant 0 : i32
    return %arg0, %c0_i32, %c0_i32_0 : i32, i32, i32
  }
  func.func @transform_3(%arg0: i32, %arg1: i32) -> (i32, i32, i32, i32) {
    %c0_i32 = arith.constant 0 : i32
    %c0_i32_0 = arith.constant 0 : i32
    %c0_i32_1 = arith.constant 0 : i32
    return %arg0, %c0_i32, %arg1, %c0_i32_0 : i32, i32, i32, i32
  }
  func.func @transform_4(%arg0: i32, %arg1: i32) -> (i32, i32, i32) {
    %c0_i32 = arith.constant 0 : i32
    %c0_i32_0 = arith.constant 0 : i32
    %c0_i32_1 = arith.constant 0 : i32
    return %arg0, %c0_i32, %c0_i32_0 : i32, i32, i32
  }
  func.func @transform_5(%arg0: i32, %arg1: i32) -> (i32, i32, i32) {
    %c0_i32 = arith.constant 0 : i32
    %c0_i32_0 = arith.constant 0 : i32
    return %arg0, %arg1, %c0_i32 : i32, i32, i32
  }
}

</mosaic_0001>

<bundles_post_ra>
// kernel: relpos_mha_forward.1
= control target key start
LH: loop header
LB: loop body
LE: loop exit
PB: predicated region body
PF: predicated region fallthrough
CT: control target
= control target key end

     0   :  { %s1191_s18 = smov 0   ;;  %s1193_s19 = smov 0   ;;  %s1341_s0 = inlined_call_operand.vmem [shape: bf16[2,8,64], index: 0, kind: input, shape index: {}]   ;;  %s1342_s1 = inlined_call_operand.vmem [shape: bf16[2,8,64], index: 1, kind: input, shape index: {}]   ;;  %s1343_s2 = inlined_call_operand.vmem [shape: bf16[2,8,64], index: 2, kind: input, shape index: {}]   ;;  %s1344_s3 = inlined_call_operand.vmem [shape: bf16[2,4,8,8], index: 3, kind: input, shape index: {}]   ;;  %s1345_s4 = inlined_call_operand.vmem [shape: f32[2,1,8], index: 4, kind: input, shape index: {}]   ;;  %s1346_s5 = inlined_call_operand.vmem [shape: f32[2,8,64], index: 5, kind: output, shape index: {}]  }
   0x1   :  { %s1195_s20 = smov 0  }
   0x2 LB: > { %s27_s21 = sadd.s32 1, %s1147_s19  ;;  %p977_p0 = scmp.ge.s32.totalorder %s1151_s20, 1  ;;  %s1151_s20 = sphi %s1195_s20, %s15_s20   ;;  %s1147_s19 = sphi %s1193_s19, %s1348_s19   ;;  %s1143_s18 = sphi %s1191_s18, %s1347_s18  }
   0x3   : > { %p29_p1 = scmp.ge.s32.totalorder %s27_s21, 2  ;;  %p246_p2 = scmp.lt.s32.totalorder %s1151_s20, 3 }
   0x5   : > { %s1350_s21 = smov (%p29_p1, %s27_s21), 0  ;;  %p247_p3 = pnand %p977_p0, %p246_p2 }
   0x6   : > { %p297_p4 = scmp.lt.s32.totalorder (!%p247_p3), %s1143_s18, 1  ;;  %v1153_v0 = vmov (!%p247_p3), 0.0   ;;  %vm1154_vm0 = vmmov (!%p247_p3), 0   ;;  %vm337_vm1 = vcmask (!%p247_p3), 130048   ;;  %s1155_s29 = smov (!%p247_p3), 112   ;;  %vm391_vm2 = vcmask (!%p247_p3), 64512  }
   0x7   : > { %250 = sbr.rel (%p247_p3) target bundleno = 1169 (0x491), region = 40  ;;  %1024 = vmatprep.subr.bf16.mxu0 (!%p247_p3), %v1153_v0  ;;  %1026 = vmatprep.mubr.msk.bf16.mxu0 (!%p247_p3), %vm1154_vm0, %v1153_v0  ;;  %s1156_s30 = smov (!%p247_p3), 96   ;;  %vm405_vm3 = vcmask (!%p247_p3), 1043456   ;;  %vm582_vm4 = vcmask (!%p247_p3), 261248   ;;  %vm714_vm5 = vcmask (!%p247_p3), 392448   ;;  %vm846_vm6 = vcmask (!%p247_p3), 523648  }
   0x8   : > { %1030 = vmatprep.subr.bf16.mxu1 (!%p247_p3), %v1153_v0  ;;  %1032 = vmatprep.mubr.msk.bf16.mxu1 (!%p247_p3), %vm1154_vm0, %v1153_v0  ;;  %s1157_s6 = smov (!%p247_p3), 80   ;;  %s1160_s26 = smov (!%p247_p3), 48  }
   0xe   : > { %s1352_s18 = smov (!%p297_p4, %s1143_s18), 1 }
   0xf   : > { %s1218_s22 = sshll.u32 %s1352_s18, 2  ;;  %s1007_s7 = sshll.u32 %s1352_s18, 4 }
  0x10   : > { %s1224_s25 = scalar_lea.vmem %s1342_s1, %s1218_s22  ;;  %s303_s28 = scalar_lea.vmem %s1341_s0, %s1218_s22 }
  0x11   : > { %v333_v1 = vld [vmem:[%s1224_s25] sm:$0xf]  ;;  %s1247_s10 = scalar_lea.vmem %s1344_s3, %s1007_s7  ;;  %s322_s13 = scalar_lea.vmem %s1345_s4, %s1352_s18 }
  0x12   : > { %v342_v2 = vsel %vm337_vm1, %v333_v1, 0  ;;  %v332_v3 = vld [vmem:[%s303_s28] sm:$0xf]  ;;  %s1263_s16 = scalar_lea.vmem %s1343_s2, %s1218_s22  ;;  %v993_v45 = vld [vmem:[%s1247_s10 + $0x8] sm:$0xff]   ;;  %s983_s17 = sshll.u32 %s1352_s18, 3 }
  0x13   : > { %1025 = vmatpush3.bf16.xpose.msra.mxu0 %v342_v2  ;;  %v1105_v4 = vld [vmem:[%s303_s28] ss:$0 sps:$4 sm:$0xff]   ;;  %v589_v49 = vunpack.c.l.bf16 %v993_v45  ;;  %v721_v63 = vunpack.c.h.bf16 %v993_v45  ;;  %s1324_s24 = scalar_lea.vmem %s1346_s5, %s983_s17  ;;  %s1159_s18 = smov 32  }
  0x14   : > { %1042 = vmatprep.subr.bf16.mxu0 %v1153_v0  ;;  %461 = vrot.lane.b32.xlu1 %v1105_v4, %s1155_s29  ;;  %v1106_v5 = vld [vmem:[%s1224_s25] ss:$0 sps:$4 sm:$0xff]  }
  0x15   : > { %v1107_v6 = vld [vmem:[%s303_s28] ss:$0 sps:$4 sm:$0xff]  }
  0x16   : > { %v1108_v7 = vld [vmem:[%s1224_s25] ss:$0 sps:$4 sm:$0xff]  }
  0x17   : > { %v1109_v8 = vld [vmem:[%s303_s28] ss:$0 sps:$4 sm:$0xff]  }
  0x18   : > { %598 = vrot.lane.b32.xlu1 %v1106_v5, %s1156_s30  ;;  %v335_v9 = vld [vmem:[%s1247_s10] sm:$0xff]  }
  0x19   : > { %v336_v10 = vunpack.c.l.bf16 %v335_v9  ;;  %v1254_v12 = vld [vmem:[%s322_s13] ss:$0 sm:$0xff]  ;;  %v457_v40 = vunpack.c.h.bf16 %v335_v9 }
  0x1a   : > { %1027 = vmatmul.mubr.msk.bf16.vlgmr.msra.gmra.mrb[0].mxu0 %vm337_vm1, %v332_v3  ;;  %v1104_v19 = vld [vmem:[%s1224_s25] ss:$0 sps:$4 sm:$0xff]   ;;  %s1158_s25 = smov 16  }
  0x1b   : > { %1044 = vmatprep.mubr.msk.bf16.mxu0 %vm1154_vm0, %v1153_v0  ;;  %v334_v20 = vld [vmem:[%s1263_s16] sm:$0xf] }
  0x1c   : > { %593 = vrot.lane.b32.xlu1 %v1107_v6, %s1156_s30  ;;  %v407_v21 = vsel %vm405_vm3, %v334_v20, 0  ;;  %v1110_v60 = vld [vmem:[%s1263_s16] ss:$0 sps:$4 sm:$0xff]  }
  0x1d   : > { %1031 = vmatpush3.bf16.msra.mxu1 %v407_v21  ;;  %v1111_v62 = vld [vmem:[%s1263_s16] ss:$0 sps:$4 sm:$0xff]  }
  0x1e   : > { %1036 = vmatprep.subr.bf16.mxu1 %v1153_v0  ;;  %v1112_v4 = vld [vmem:[%s1263_s16] ss:$0 sps:$4 sm:$0xff]  }
  0x20   : > { %730 = vrot.lane.b32.xlu1 %v1108_v7, %s1157_s6 }
  0x24   : > { %725 = vrot.lane.b32.xlu1 %v1109_v8, %s1157_s6 }
  0x86   : > { %v462_v27 = vpop.permute.xlu1 %461 }
  0x8a   : > { %v599_v30 = vpop.permute.xlu1 %598 }
  0x8b   : > { %v604_v31 = vsel %vm337_vm1, %v599_v30, 0 }
  0x8e   : > { %v594_v32 = vpop.permute.xlu1 %593 }
  0x92   : > { %v731_v33 = vpop.permute.xlu1 %730 }
  0x93   : > { %v736_v34 = vsel %vm337_vm1, %v731_v33, 0 }
  0x96   : > { %v726_v35 = vpop.permute.xlu1 %725 }
  0xed   : > { %v378_v11 = vpop.f32.mrb[0].mxu0 }
  0xee   : > { %v379_v13 = vadd.f32 %v378_v11, %v336_v10  ;;  %v1028_v14 = vpop.f32.mrb[1].mxu0 }
  0xef   : > { %v381_v15 = vpop.f32.mrb[2].mxu0 }
  0xf0   : > { %v1029_v16 = vpop.f32.mrb[3].mxu0  ;;  %v390_v17 = vadd.f32 %v1254_v12, %v379_v13 }
  0xf2   : > { %v392_v18 = vsel %vm391_vm2, %v390_v17, -inf }
  0xf3   : > { %393 = vmax.xlane.f32.xlu0 %v392_v18 }
 0x109   : > { %466 = vrot.lane.b32.xlu0 %v1104_v19, %s1155_s29 }
 0x180   : > { %v394_v22 = vpop.xlane.xlu0 %393 }
 0x181   : > { %v395_v23 = vsub.f32 %v390_v17, %v394_v22 }
 0x183   : > { %v396_v24 = vmul.f32 1.442695, %v395_v23 }
 0x184   : > { %v467_v25 = vpop.permute.xlu0 %466 }
 0x185   : > { %1113 = vpow2.f32 %v396_v24  ;;  %v472_v28 = vsel %vm337_vm1, %v467_v25, 0 }
 0x18f   : > { %v1269_v26 = vpop.eup %1113 }
 0x190   : > { %v401_v29 = vpack.c.bf16 %v1269_v26, %v1269_v26  ;;  %v398_v30 = vsel %vm391_vm2, %v1269_v26, 0.0 }
 0x192   : > { %1033 = vmatmul.mubr.msk.bf16.vlgmr.msra.gmra.mrb[0].mxu1 %vm391_vm2, %v401_v29 }
 0x193   : > { %1037 = vmatpush3.bf16.xpose.msra.mxu1 %v472_v28  ;;  %1038 = vmatprep.mubr.msk.bf16.mxu1 %vm1154_vm0, %v1153_v0 }
 0x194   : > { %1048 = vmatprep.subr.bf16.mxu1 %v1153_v0 }
 0x19a   : > { %1039 = vmatmul.mubr.msk.bf16.vlgmr.msra.gmra.mrb[4].mxu1 %vm337_vm1, %v462_v27 }
 0x19b   : > { %1049 = vmatpush3.bf16.xpose.msra.mxu1 %v604_v31  ;;  %1050 = vmatprep.mubr.msk.bf16.mxu1 %vm1154_vm0, %v1153_v0 }
 0x19c   : > { %1060 = vmatprep.subr.bf16.mxu1 %v1153_v0 }
 0x1a2   : > { %1051 = vmatmul.mubr.msk.bf16.vlgmr.msra.gmra.mrb[8].mxu1 %vm337_vm1, %v594_v32 }
 0x1a3   : > { %1061 = vmatpush3.bf16.xpose.msra.mxu1 %v736_v34  ;;  %1062 = vmatprep.mubr.msk.bf16.mxu1 %vm1154_vm0, %v1153_v0 }
 0x1aa   : > { %1063 = vmatmul.mubr.msk.bf16.vlgmr.msra.gmra.mrb[12].mxu1 %vm337_vm1, %v726_v35 }
 0x265   : > { %v1288_v36 = vpop.f32.mrb[0].mxu1 }
 0x266   : > { %v1034_v37 = vpop.f32.mrb[1].mxu1 }
 0x267   : > { %v446_v38 = vpop.f32.mrb[2].mxu1 }
 0x268   : > { %v1035_v39 = vpop.f32.mrb[3].mxu1 }
 0x26d   : > { %v508_v41 = vpop.f32.mrb[4].mxu1 }
 0x26e   : > { %v509_v42 = vadd.f32 %v508_v41, %v457_v40  ;;  %v1040_v43 = vpop.f32.mrb[5].mxu1 }
 0x26f   : > { %v511_v44 = vpop.f32.mrb[6].mxu1 }
 0x270   : > { %v1041_v46 = vpop.f32.mrb[7].mxu1  ;;  %v514_v47 = vadd.f32 %v1254_v12, %v509_v42 }
 0x272   : > { %v515_v48 = vsel %vm391_vm2, %v514_v47, -inf }
 0x273   : > { %516 = vmax.xlane.f32.xlu1 %v515_v48 }
 0x275   : > { %v640_v50 = vpop.f32.mrb[8].mxu1 }
 0x276   : > { %v641_v51 = vadd.f32 %v640_v50, %v589_v49  ;;  %v1052_v52 = vpop.f32.mrb[9].mxu1 }
 0x277   : > { %v643_v53 = vpop.f32.mrb[10].mxu1 }
 0x278   : > { %v646_v54 = vadd.f32 %v1254_v12, %v641_v51  ;;  %v1053_v55 = vpop.f32.mrb[11].mxu1 }
 0x27a   : > { %v647_v56 = vsel %vm391_vm2, %v646_v54, -inf }
 0x27b   : > { %648 = vmax.xlane.f32.xlu0 %v647_v56 }
 0x27d   : > { %v772_v57 = vpop.f32.mrb[12].mxu1 }
 0x27e   : > { %v1064_v58 = vpop.f32.mrb[13].mxu1  ;;  %v773_v1 = vadd.f32 %v772_v57, %v721_v63 }
 0x27f   : > { %v775_v59 = vpop.f32.mrb[14].mxu1 }
 0x280   : > { %v1065_v61 = vpop.f32.mrb[15].mxu1  ;;  %v778_v2 = vadd.f32 %v1254_v12, %v773_v1 }
 0x282   : > { %v779_v3 = vsel %vm391_vm2, %v778_v2, -inf }
 0x284   : > { %660 = vrot.lane.b32.xlu1 %v1110_v60, %s1156_s30 }
 0x291   : > { %528 = vrot.lane.b32.xlu0 %v1111_v62, %s1155_s29 }
 0x2a8   : > { %780 = vmax.xlane.f32.xlu1 %v779_v3 }
 0x2b9   : > { %792 = vrot.lane.b32.xlu1 %v1112_v4, %s1157_s6 }
 0x300   : > { %v517_v5 = vpop.xlane.xlu1 %516 }
 0x301   : > { %v518_v6 = vsub.f32 %v514_v47, %v517_v5 }
 0x303   : > { %v519_v7 = vmul.f32 1.442695, %v518_v6 }
 0x304   : > { %v661_v12 = vpop.permute.xlu1 %660 }
 0x305   : > { %1115 = vpow2.f32 %v519_v7  ;;  %v666_v17 = vsel %vm405_vm3, %v661_v12, 0 }
 0x308   : > { %v649_v8 = vpop.xlane.xlu0 %648 }
 0x309   : > { %v650_v9 = vsub.f32 %v646_v54, %v649_v8 }
 0x30b   : > { %v651_v10 = vmul.f32 1.442695, %v650_v9 }
 0x30c   : > { %v529_v11 = vpop.permute.xlu0 %528 }
 0x30d   : > { %1117 = vpow2.f32 %v651_v10  ;;  %v534_v13 = vsel %vm405_vm3, %v529_v11, 0 }
 0x30e   : > { %1043 = vmatpush3.bf16.msra.mxu0 %v534_v13 }
 0x30f   : > { %v1116_v14 = vpop.eup %1115  ;;  %1054 = vmatprep.subr.bf16.mxu0 %v1153_v0 }
 0x310   : > { %v521_v15 = vsel %vm391_vm2, %v1116_v14, 0.0  ;;  %v524_v16 = vpack.c.bf16 %v1116_v14, %v1116_v14 }
 0x311   : > { %522 = vadd.xlane.f32.xlu0 %v521_v15 }
 0x312   : > { %1045 = vmatmul.mubr.msk.bf16.vlgmr.msra.gmra.mrb[4].mxu0 %vm391_vm2, %v524_v16 }
 0x313   : > { %1055 = vmatpush3.bf16.msra.mxu0 %v666_v17  ;;  %1056 = vmatprep.mubr.msk.bf16.mxu0 %vm1154_vm0, %v1153_v0 }
 0x314   : > { %1066 = vmatprep.subr.bf16.mxu0 %v1153_v0 }
 0x317   : > { %v1118_v18 = vpop.eup %1117 }
 0x318   : > { %v653_v19 = vsel %vm391_vm2, %v1118_v18, 0.0  ;;  %v656_v20 = vpack.c.bf16 %v1118_v18, %v1118_v18 }
 0x319   : > { %654 = vadd.xlane.f32.xlu1 %v653_v19 }
 0x31a   : > { %1057 = vmatmul.mubr.msk.bf16.vlgmr.msra.gmra.mrb[8].mxu0 %vm391_vm2, %v656_v20 }
 0x31b   : > { %1068 = vmatprep.mubr.msk.bf16.mxu0 %vm1154_vm0, %v1153_v0 }
 0x335   : > { %v781_v21 = vpop.xlane.xlu1 %780 }
 0x336   : > { %v782_v22 = vsub.f32 %v778_v2, %v781_v21 }
 0x338   : > { %v783_v23 = vmul.f32 1.442695, %v782_v22 }
 0x339   : > { %v793_v24 = vpop.permute.xlu1 %792 }
 0x33a   : > { %1119 = vpow2.f32 %v783_v23  ;;  %v798_v25 = vsel %vm405_vm3, %v793_v24, 0 }
 0x33b   : > { %1067 = vmatpush3.bf16.msra.mxu0 %v798_v25 }
 0x344   : > { %v1120_v27 = vpop.eup %1119 }
 0x345   : > { %v785_v28 = vsel %vm391_vm2, %v1120_v27, 0.0  ;;  %v788_v29 = vpack.c.bf16 %v1120_v27, %v1120_v27 }
 0x346   : > { %786 = vadd.xlane.f32.xlu0 %v785_v28 }
 0x347   : > { %1069 = vmatmul.mubr.msk.bf16.vlgmr.msra.gmra.mrb[12].mxu0 %vm391_vm2, %v788_v29 }
 0x34a   : > { %399 = vadd.xlane.f32.xlu0 %v398_v30 }
 0x39e   : > { %v523_v0 = vpop.xlane.xlu0 %522 }
 0x3a6   : > { %v655_v33 = vpop.xlane.xlu1 %654 }
 0x3d3   : > { %v787_v31 = vpop.xlane.xlu0 %786 }
 0x3d7   : > { %v400_v32 = vpop.xlane.xlu0 %399 }
 0x3d8   : > { %1121 = vrcp.f32 %v400_v32 }
 0x3d9   : > { %1123 = vrcp.f32 %v523_v0 }
 0x3da   : > { %1125 = vrcp.f32 %v655_v33 }
 0x3db   : > { %1127 = vrcp.f32 %v787_v31 }
 0x3e2   : > { %v1122_v34 = vpop.eup %1121 }
 0x3e3   : > { %v450_v35 = vmul.f32 %v1122_v34, %v1288_v36  ;;  %v1124_v37 = vpop.eup %1123 }
 0x3e4   : > { %v1126_v42 = vpop.eup %1125 }
 0x3e5   : > { %v570_v26 = vpop.f32.mrb[4].mxu0  ;;  %451 = vst.msk [vmem:[%s1324_s24] sm:$0xff] %vm337_vm1, %v450_v35  ;;  %v1128_v47 = vpop.eup %1127 }
 0x3e6   : > { %v577_v38 = vmul.f32 %v1124_v37, %v570_v26  ;;  %v1046_v39 = vpop.f32.mrb[5].mxu0 }
 0x3e7   : > { %v573_v40 = vpop.f32.mrb[6].mxu0 }
 0x3e8   : > { %579 = vrot.lane.b32.xlu1 %v577_v38, %s1158_s25  ;;  %v1047_v41 = vpop.f32.mrb[7].mxu0 }
 0x3ed   : > { %v702_v43 = vpop.f32.mrb[8].mxu0 }
 0x3ee   : > { %v709_v44 = vmul.f32 %v1126_v42, %v702_v43  ;;  %v1058_v45 = vpop.f32.mrb[9].mxu0 }
 0x3ef   : > { %v705_v46 = vpop.f32.mrb[10].mxu0 }
 0x3f0   : > { %711 = vrot.lane.b32.xlu0 %v709_v44, %s1159_s18  ;;  %v1059_v36 = vpop.f32.mrb[11].mxu0 }
 0x41a   : > { %v834_v48 = vpop.f32.mrb[12].mxu0 }
 0x41b   : > { %v841_v49 = vmul.f32 %v1128_v47, %v834_v48  ;;  %v1070_v50 = vpop.f32.mrb[13].mxu0 }
 0x41c   : > { %v837_v51 = vpop.f32.mrb[14].mxu0 }
 0x41d   : > { %843 = vrot.lane.b32.xlu1 %v841_v49, %s1160_s26  ;;  %v1071_v52 = vpop.f32.mrb[15].mxu0 }
 0x45a   : > { %v580_v53 = vpop.permute.xlu1 %579 }
 0x45b   : > { %583 = vst.msk [vmem:[%s1324_s24] sm:$0xff] %vm582_vm4, %v580_v53 }
 0x462   : > { %v712_v54 = vpop.permute.xlu0 %711 }
 0x463   : > { %715 = vst.msk [vmem:[%s1324_s24] sm:$0xff] %vm714_vm5, %v712_v54 }
 0x48f   : > { %v844_v55 = vpop.permute.xlu1 %843 }
 0x490   : > { %847 = vst.msk [vmem:[%s1324_s24] sm:$0xff] %vm846_vm6, %v844_v55 }
 0x491 PF: > { %s15_s20 = sadd.s32 1, %s1151_s20   ;;  %s1347_s18 = smov %s1147_s19 }
 0x492   : > { %p12_p5 = scmp.ge.s32.totalorder %s15_s20, 4   ;;  %s1348_s19 = smov %s1350_s21 }
 0x494   :  { %14 = sbr.rel (!%p12_p5) target bundleno = 2 (0x2), region = 85 }

</bundles_post_ra>
